<compile_context>
chip_gen: v7x
topology: tpu7x:2x2x1
jax: 0.10.0
libtpu: 0.0.40
codegen_flags: <defaults>
</compile_context>

<pallas_src>
import functools
import math

import jax
import jax.numpy as jnp
from jax.experimental import pallas as pl
from jax.experimental.pallas import tpu as pltpu


def _round_up(x, m):
    return ((x + m - 1) // m) * m


def _pad2d(a, rows, cols):
    return jnp.pad(a, ((0, rows - a.shape[0]), (0, cols - a.shape[1])))


@functools.lru_cache(maxsize=1)
def _vmem_cap_bytes():
    # Generation-aware scoped-VMEM ceiling: ~48 MiB on v7x (64 MiB physical),
    # ~96 MiB on v5e/v6e (128 MiB physical).
    try:
        cap = int(pltpu.get_tpu_info().vmem_capacity_bytes)
    except Exception:
        cap = 64 << 20  # conservative fallback (v7x physical VMEM)
    return (cap * 3) // 4


def _vmem_limit(needed_bytes):
    return int(min(max(2 * needed_bytes, 4 << 20), _vmem_cap_bytes()))


def _maybe_buffered_spec(block_shape, index_map, *, buffers):
    # Depth-3 pipelining on the streamed weight tiles keeps the HBM DMA queue
    # full when per-tile MXU work is tiny; fall back to the default depth-2
    # pipeline if this JAX build lacks pipeline_mode / pl.Buffered.
    try:
        return pl.BlockSpec(block_shape, index_map,
                            pipeline_mode=pl.Buffered(buffers))
    except (TypeError, AttributeError):
        return pl.BlockSpec(block_shape, index_map)


# ----------------------------------------------------------------------------
# Kernel 1: classifier (BN folded, split-K over img/text) + L2 row-normalize,
#           tiled over the batch dimension.
# ----------------------------------------------------------------------------
def embed_kernel(img_ref, txt_ref, wi_ref, wt_ref, b_ref, xn_ref):
    # img : [tile_b, Cip]  image features (bf16)
    # txt : [tile_b, Htp]  text  features (bf16)
    # wi  : [Cip, Fp]      BN-folded classifier weight, image slice (bf16, resident)
    # wt  : [Htp, Fp]      BN-folded classifier weight, text  slice (bf16, resident)
    # b   : [1,  Fp]       BN-folded bias (f32, resident)
    # xn  : [tile_b, Fp]   L2-normalized embedding (compute dtype)
    # Dropout(p=0.3) is identity in eval mode.
    x = jnp.dot(img_ref[...], wi_ref[...], preferred_element_type=jnp.float32)
    x += jnp.dot(txt_ref[...], wt_ref[...], preferred_element_type=jnp.float32)
    x += b_ref[...]                                   # f32 bias add
    # F.normalize(x): x * rsqrt(max(sum(x^2), eps^2)) ; rsqrt -> EUP slot
    inv = jax.lax.rsqrt(jnp.maximum(jnp.sum(x * x, axis=-1, keepdims=True),
                                    1e-24))
    xn_ref[...] = (x * inv).astype(xn_ref.dtype)


def shopee_embed(img_feat, txt_feat, w_img, w_txt, bias, *, tile_b, out_dtype):
    bp, ci_p = img_feat.shape
    ht_p = txt_feat.shape[1]
    fp = w_img.shape[1]
    grid = (bp // tile_b,)

    w_bytes = ((ci_p + ht_p) * fp * w_img.dtype.itemsize) + fp * 4
    act_bytes = tile_b * (ci_p + ht_p) * img_feat.dtype.itemsize
    out_bytes = tile_b * fp * jnp.dtype(out_dtype).itemsize
    needed = w_bytes + 2 * (act_bytes + out_bytes)

    cost = pl.CostEstimate(
        flops=2 * bp * (ci_p + ht_p) * fp,
        transcendentals=bp,
        bytes_accessed=(bp * (ci_p + ht_p) * img_feat.dtype.itemsize
                        + w_bytes
                        + bp * fp * jnp.dtype(out_dtype).itemsize),
    )

    return pl.pallas_call(
        embed_kernel,
        out_shape=jax.ShapeDtypeStruct((bp, fp), out_dtype),
        grid=grid,
        in_specs=[
            pl.BlockSpec((tile_b, ci_p), lambda i: (i, 0)),   # img: streamed over B
            pl.BlockSpec((tile_b, ht_p), lambda i: (i, 0)),   # txt: streamed over B
            pl.BlockSpec((ci_p, fp), lambda i: (0, 0)),       # wi : resident
            pl.BlockSpec((ht_p, fp), lambda i: (0, 0)),       # wt : resident
            pl.BlockSpec((1, fp), lambda i: (0, 0)),          # bias: resident
        ],
        out_specs=pl.BlockSpec((tile_b, fp), lambda i: (i, 0)),
        compiler_params=pltpu.CompilerParams(
            dimension_semantics=("parallel",),   # batch tiles across TCs (v7x)
            vmem_limit_bytes=_vmem_limit(needed),
        ),
        cost_estimate=cost,
    )(img_feat, txt_feat, w_img, w_txt, bias)


# ----------------------------------------------------------------------------
# Kernel 2: ArcFace cosine logits, tiled & pipelined over the class dim O
# ----------------------------------------------------------------------------
def arcface_cosine_kernel(xn_ref, wnt_ref, cos_ref):
    # xn  : [Bp, Fp]       normalized embedding (resident across the grid)
    # wnt : [Fp, TILE_O]   pre-normalized, pre-transposed ArcFace weight tile
    # cos : [Bp, TILE_O]   cosine logits tile (f32 or bf16)
    cos_ref[...] = jnp.dot(xn_ref[...], wnt_ref[...],
                           preferred_element_type=jnp.float32
                           ).astype(cos_ref.dtype)


def arcface_cosine(xn, wn_t, *, tile_o, out_dtype):
    bp, fp = xn.shape
    op = wn_t.shape[1]
    grid = (op // tile_o,)

    xb = xn.dtype.itemsize
    wb = wn_t.dtype.itemsize
    ob = jnp.dtype(out_dtype).itemsize
    # resident xn + (up to) triple-buffered weight tiles + double-buffered out
    needed = bp * fp * xb + 3 * fp * tile_o * wb + 2 * bp * tile_o * ob

    cost = pl.CostEstimate(
        flops=2 * bp * fp * op,
        transcendentals=0,
        bytes_accessed=bp * fp * xb + fp * op * wb + bp * op * ob,
    )

    # TODO(synk): optional weight-stream quantization (int8 on v5e/v6e, fp8 on
    # v7x — v7x MXU has no int path) skipped pending accuracy re-validation.
    return pl.pallas_call(
        arcface_cosine_kernel,
        out_shape=jax.ShapeDtypeStruct((bp, op), out_dtype),
        grid=grid,
        in_specs=[
            pl.BlockSpec((bp, fp), lambda o: (0, 0)),            # xn: resident
            _maybe_buffered_spec((fp, tile_o), lambda o: (0, o),  # wn^T: streamed
                                 buffers=3),
        ],
        out_specs=pl.BlockSpec((bp, tile_o), lambda o: (0, o)),
        compiler_params=pltpu.CompilerParams(
            dimension_semantics=("parallel",),   # split O across both TCs (v7x)
            vmem_limit_bytes=_vmem_limit(needed),
        ),
        cost_estimate=cost,
    )(xn, wn_t)


# ----------------------------------------------------------------------------
# Model wrapper (deterministic parameters, one-time hoisted precompute)
# ----------------------------------------------------------------------------
class ShopeeCombinedPallas:
    def __init__(self, key, *, img_channels, cnn_out_channels, hidden_size,
                 vocab_size, feature_space, out_features, scale=30.0,
                 margin=0.5, compute_dtype=jnp.bfloat16, logits_dtype=None):
        self.feature_space = feature_space
        self.out_features = out_features
        self.scale = scale      # unused on the label=None (inference) path
        self.margin = margin    # unused on the label=None (inference) path
        self.in_features = hidden_size + cnn_out_channels
        self.compute_dtype = compute_dtype
        self.logits_dtype = logits_dtype   # None -> auto (bf16 for large B)

        k = iter(jax.random.split(key, 8))

        # TODO(synk): timm pretrained CNN backbone has no Pallas equivalent;
        # replaced by global-average-pool + linear projection stand-in.
        self.w_backbone = jax.random.normal(
            next(k), (cnn_out_channels, img_channels), jnp.float32) * 0.1

        # TODO(synk): transformers BERT encoder has no Pallas equivalent;
        # replaced by a deterministic token-embedding [CLS]-style stand-in.
        self.embed_table = jax.random.normal(
            next(k), (vocab_size, hidden_size), jnp.float32) * 0.1

        # classifier: Linear(in_features, feature_space), xavier_normal_, 0 bias
        std = math.sqrt(2.0 / (self.in_features + feature_space))
        self.wc = jax.random.normal(
            next(k), (feature_space, self.in_features), jnp.float32) * std
        self.bc = jnp.zeros((1, feature_space), jnp.float32)

        # BatchNorm1d(feature_space), eval mode, default running stats
        self.gamma = jnp.ones((1, feature_space), jnp.float32)
        self.beta = jnp.zeros((1, feature_space), jnp.float32)
        self.running_mean = jnp.zeros((1, feature_space), jnp.float32)
        self.running_var = jnp.ones((1, feature_space), jnp.float32)

        # ArcFace weight: xavier_uniform_ over (out_features, feature_space)
        bound = math.sqrt(6.0 / (feature_space + out_features))
        self.warc = jax.random.uniform(
            next(k), (out_features, feature_space), jnp.float32, -bound, bound)

        # ---- one-time hoisted precompute -----------------------------------
        fp = _round_up(feature_space, 128)           # lane-aligned F
        ci_p = _round_up(cnn_out_channels, 128)      # lane-aligned contraction
        ht_p = _round_up(hidden_size, 128)           # lane-aligned contraction
        self._fp, self._ci_p, self._ht_p = fp, ci_p, ht_p

        # ArcFace class-dim tiling: decouple the O padding from the tile choice
        # so the (HBM-bound) padded weight stream stays small.
        if out_features < 1024:
            self.tile_o = _round_up(out_features, 128)
            op = self.tile_o
        else:
            op_1024 = _round_up(out_features, 1024)
            if (op_1024 - out_features) * 8 <= out_features:   # <=12.5% waste
                self.tile_o, op = 1024, op_1024
            else:
                self.tile_o, op = 512, _round_up(out_features, 512)
        self._op = op

        # Fold BatchNorm1d(eval) into the classifier Linear.
        s = self.gamma * jax.lax.rsqrt(self.running_var + 1e-5)       # [1, F]
        wc_fold = self.wc * s.T                                       # [F, Din]
        bc_fold = (self.bc - self.running_mean) * s + self.beta       # [1, F]

        # Split along Din (concat order: img first, then text), pre-transpose
        # so the in-kernel contraction uses native dims; zero-pad both the
        # contraction dims (Ci/Ht) and F; store in the MXU compute dtype.
        wi = wc_fold[:, :cnn_out_channels].T                          # [Ci, F]
        wt = wc_fold[:, cnn_out_channels:].T                          # [Ht, F]
        self.w_cls_img = _pad2d(wi, ci_p, fp).astype(compute_dtype)   # [Cip, Fp]
        self.w_cls_txt = _pad2d(wt, ht_p, fp).astype(compute_dtype)   # [Htp, Fp]
        self.b_cls = _pad2d(bc_fold, 1, fp)                           # f32 bias

        # Hoist ArcFace weight normalization: normalize once, zero-pad to
        # [Op, Fp], pre-transpose to [Fp, Op], cast to the MXU compute dtype.
        wn = self.warc * jax.lax.rsqrt(
            jnp.maximum(jnp.sum(self.warc * self.warc, axis=-1, keepdims=True),
                        1e-24))
        self.wn_t = _pad2d(wn, op, fp).T.astype(compute_dtype)        # [Fp, Op]

    # ---- plain-JAX stand-ins for external backbones ----
    def _backbone(self, img):
        pooled = jnp.mean(img, axis=(2, 3))            # [B, C] global avg pool
        return pooled @ self.w_backbone.T              # [B, cnn_out_channels]

    def _transformer(self, input_ids, attention_mask):
        cls_emb = self.embed_table[input_ids[:, 0]]    # [B, hidden]
        return cls_emb * attention_mask[:, :1].astype(jnp.float32)

    # ---- forward (eval: dropout=identity, ArcFace label=None -> cos_theta) ----
    def __call__(self, img, input_ids, attention_mask):
        b = img.shape[0]
        img_feat = self._backbone(img)                              # [B, Ci]
        txt_feat = self._transformer(input_ids, attention_mask)     # [B, Ht]

        # bf16 packs two rows per sublane -> round batch to 16.
        bp = _round_up(b, 16)
        if bp > 512:
            tile_b = 256
            bp = _round_up(bp, tile_b)
        else:
            tile_b = bp

        img_feat = jnp.pad(
            img_feat, ((0, bp - b), (0, self._ci_p - img_feat.shape[1]))
        ).astype(self.compute_dtype)
        txt_feat = jnp.pad(
            txt_feat, ((0, bp - b), (0, self._ht_p - txt_feat.shape[1]))
        ).astype(self.compute_dtype)

        xn = shopee_embed(img_feat, txt_feat, self.w_cls_img, self.w_cls_txt,
                          self.b_cls, tile_b=tile_b,
                          out_dtype=self.compute_dtype)

        # Output dtype: for large batches the f32 output write dominates the
        # HBM traffic of this mem-bound matmul -> default to bf16 there.
        out_dtype = self.logits_dtype
        if out_dtype is None:
            out_dtype = self.compute_dtype if b >= 256 else jnp.float32

        cos = arcface_cosine(xn, self.wn_t, tile_o=self.tile_o,
                             out_dtype=out_dtype)
        return cos[:b, :self.out_features]


# Pure-JAX f32 reference (un-folded, un-padded) for validation.
def reference_forward(model, img, input_ids, attention_mask):
    img_feat = model._backbone(img)
    txt_feat = model._transformer(input_ids, attention_mask)
    feat = jnp.concatenate([img_feat, txt_feat], axis=1)
    x = feat @ model.wc.T + model.bc
    x = (x - model.running_mean) * jax.lax.rsqrt(model.running_var + 1e-5)
    x = x * model.gamma + model.beta
    xn = x / jnp.maximum(jnp.linalg.norm(x, axis=-1, keepdims=True), 1e-12)
    wn = model.warc / jnp.maximum(
        jnp.linalg.norm(model.warc, axis=-1, keepdims=True), 1e-12)
    return xn @ wn.T


# ----------------------------------------------------------------------------
if __name__ == "__main__":
    key = jax.random.PRNGKey(0)
    k_model, k_img, k_ids = jax.random.split(key, 3)

    B, C, H, W = 2, 4, 16, 16
    SEQ, VOCAB, HIDDEN = 8, 64, 32
    CNN_OUT = 8
    FEATURE_SPACE = 32
    OUT_FEATURES = 16

    model = ShopeeCombinedPallas(
        k_model,
        img_channels=C, cnn_out_channels=CNN_OUT,
        hidden_size=HIDDEN, vocab_size=VOCAB,
        feature_space=FEATURE_SPACE, out_features=OUT_FEATURES,
        scale=30.0, margin=0.5,
        compute_dtype=jnp.bfloat16,   # bf16 MXU operands, f32 accumulation
    )

    img = jax.random.normal(k_img, (B, C, H, W), jnp.float32)          # NCHW
    input_ids = jax.random.randint(k_ids, (B, SEQ), 0, VOCAB, jnp.int32)
    attention_mask = jnp.ones((B, SEQ), jnp.int32)

    logits = model(img, input_ids, attention_mask)
    jax.block_until_ready(logits)

    ref = reference_forward(model, img, input_ids, attention_mask)

    assert logits.shape == (B, OUT_FEATURES)
    logits_f32 = logits.astype(jnp.float32)
    assert bool(jnp.all(jnp.abs(logits_f32) <= 1.0 + 2e-2))   # cosine logits
    assert bool(jnp.allclose(logits_f32, ref, atol=2e-2, rtol=0.0)), (
        "max abs err %.5f" % float(jnp.max(jnp.abs(logits_f32 - ref))))
    print("KERNEL_OK")
</pallas_src>

<mosaic_0001>
module attributes {stable_mosaic.version = 11 : i64} {
  func.func @embed_kernel(%arg0: i32, %arg1: memref<16x128xbf16, #tpu.memory_space<vmem>>, %arg2: memref<16x128xbf16, #tpu.memory_space<vmem>>, %arg3: memref<128x128xbf16, #tpu.memory_space<vmem>>, %arg4: memref<128x128xbf16, #tpu.memory_space<vmem>>, %arg5: memref<1x128xf32, #tpu.memory_space<vmem>>, %arg6: memref<16x128xbf16, #tpu.memory_space<vmem>>) attributes {dimension_semantics = [#tpu.dimension_semantics<parallel>], iteration_bounds = array<i64: 1>, scalar_prefetch = 0 : i64, scratch_operands = 0 : i64, tpu.core_type = #tpu.core_type<tc>, window_params = [{transform_indices = @transform_0, window_bounds = array<i64: 16, 128>}, {transform_indices = @transform_1, window_bounds = array<i64: 16, 128>}, {pipeline_mode = #tpu.pipeline_mode<synchronous>, transform_indices = @transform_2, window_bounds = array<i64: 128, 128>}, {pipeline_mode = #tpu.pipeline_mode<synchronous>, transform_indices = @transform_3, window_bounds = array<i64: 128, 128>}, {pipeline_mode = #tpu.pipeline_mode<synchronous>, transform_indices = @transform_4, window_bounds = array<i64: 1, 128>}, {transform_indices = @transform_5, window_bounds = array<i64: 16, 128>}]} {
    %c0 = arith.constant 0 : index
    %c0_0 = arith.constant 0 : index
    %0 = vector.load %arg1[%c0, %c0_0] : memref<16x128xbf16, #tpu.memory_space<vmem>>, vector<16x128xbf16>
    %c0_1 = arith.constant 0 : index
    %c0_2 = arith.constant 0 : index
    %1 = vector.load %arg3[%c0_1, %c0_2] : memref<128x128xbf16, #tpu.memory_space<vmem>>, vector<128x128xbf16>
    %cst = arith.constant dense<0.000000e+00> : vector<16x128xf32>
    %2 = tpu.matmul %0, %1, %cst {dimension_numbers = #tpu.dot_dimension_numbers<[1], [0], [0], [1], [0, 0, 1, 1], [], []>} : vector<16x128xbf16>, vector<128x128xbf16>, vector<16x128xf32> -> vector<16x128xf32>
    %c0_3 = arith.constant 0 : index
    %c0_4 = arith.constant 0 : index
    %3 = vector.load %arg2[%c0_3, %c0_4] : memref<16x128xbf16, #tpu.memory_space<vmem>>, vector<16x128xbf16>
    %c0_5 = arith.constant 0 : index
    %c0_6 = arith.constant 0 : index
    %4 = vector.load %arg4[%c0_5, %c0_6] : memref<128x128xbf16, #tpu.memory_space<vmem>>, vector<128x128xbf16>
    %cst_7 = arith.constant dense<0.000000e+00> : vector<16x128xf32>
    %5 = tpu.matmul %3, %4, %cst_7 {dimension_numbers = #tpu.dot_dimension_numbers<[1], [0], [0], [1], [0, 0, 1, 1], [], []>} : vector<16x128xbf16>, vector<128x128xbf16>, vector<16x128xf32> -> vector<16x128xf32>
    %6 = arith.addf %2, %5 : vector<16x128xf32>
    %c0_8 = arith.constant 0 : index
    %c0_9 = arith.constant 0 : index
    %7 = vector.load %arg5[%c0_8, %c0_9] : memref<1x128xf32, #tpu.memory_space<vmem>>, vector<1x128xf32>
    %8 = vector.broadcast %7 : vector<1x128xf32> to vector<16x128xf32>
    %9 = arith.addf %6, %8 : vector<16x128xf32>
    %10 = arith.mulf %9, %9 : vector<16x128xf32>
    %cst_10 = arith.constant dense<0.000000e+00> : vector<16xf32>
    %11 = vector.multi_reduction <add>, %10, %cst_10 [1] : vector<16x128xf32> to vector<16xf32>
    %12 = vector.shape_cast %11 : vector<16xf32> to vector<16x1xf32>
    %cst_11 = arith.constant 1.000000e-24 : f32
    %13 = vector.broadcast %cst_11 : f32 to vector<16x1xf32>
    %14 = arith.maximumf %12, %13 : vector<16x1xf32>
    %15 = math.rsqrt %14 : vector<16x1xf32>
    %16 = vector.broadcast %15 : vector<16x1xf32> to vector<16x128xf32>
    %17 = arith.mulf %9, %16 : vector<16x128xf32>
    %18 = arith.truncf %17 : vector<16x128xf32> to vector<16x128xbf16>
    %c0_12 = arith.constant 0 : index
    %c0_13 = arith.constant 0 : index
    %19 = vector.load %arg6[%c0_12, %c0_13] : memref<16x128xbf16, #tpu.memory_space<vmem>>, vector<16x128xbf16>
    tpu.vector_store %arg6[%c0_12, %c0_13], %18 {strides = array<i32>} : memref<16x128xbf16, #tpu.memory_space<vmem>>, vector<16x128xbf16>,
    return
  }
  func.func @transform_0(%arg0: i32) -> (i32, i32) {
    %c0_i32 = arith.constant 0 : i32
    %c0_i32_0 = arith.constant 0 : i32
    return %arg0, %c0_i32 : i32, i32
  }
  func.func @transform_1(%arg0: i32) -> (i32, i32) {
    %c0_i32 = arith.constant 0 : i32
    %c0_i32_0 = arith.constant 0 : i32
    return %arg0, %c0_i32 : i32, i32
  }
  func.func @transform_2(%arg0: i32) -> (i32, i32) {
    %c0_i32 = arith.constant 0 : i32
    %c0_i32_0 = arith.constant 0 : i32
    %c0_i32_1 = arith.constant 0 : i32
    return %c0_i32, %c0_i32_0 : i32, i32
  }
  func.func @transform_3(%arg0: i32) -> (i32, i32) {
    %c0_i32 = arith.constant 0 : i32
    %c0_i32_0 = arith.constant 0 : i32
    %c0_i32_1 = arith.constant 0 : i32
    return %c0_i32, %c0_i32_0 : i32, i32
  }
  func.func @transform_4(%arg0: i32) -> (i32, i32) {
    %c0_i32 = arith.constant 0 : i32
    %c0_i32_0 = arith.constant 0 : i32
    %c0_i32_1 = arith.constant 0 : i32
    return %c0_i32, %c0_i32_0 : i32, i32
  }
  func.func @transform_5(%arg0: i32) -> (i32, i32) {
    %c0_i32 = arith.constant 0 : i32
    %c0_i32_0 = arith.constant 0 : i32
    return %arg0, %c0_i32 : i32, i32
  }
}

</mosaic_0001>

<bundles_post_ra>
// kernel: tpu_custom_call.1
= control target key start
LH: loop header
LB: loop body
LE: loop exit
PB: predicated region body
PF: predicated region fallthrough
CT: control target
= control target key end

     0   :  { %10 = vsyncpa [#allocation3], 0  ;;  %s719_s0 = inlined_call_operand.hbm [shape: bf16[16,128], index: 0, kind: input, shape index: {}]   ;;  %s720_s1 = inlined_call_operand.hbm [shape: bf16[16,128], index: 1, kind: input, shape index: {}]   ;;  %s721_s2 = inlined_call_operand.hbm [shape: bf16[128,128], index: 2, kind: input, shape index: {}]   ;;  %s722_s3 = inlined_call_operand.hbm [shape: bf16[128,128], index: 3, kind: input, shape index: {}]   ;;  %s723_s4 = inlined_call_operand.vmem [shape: f32[1,128], index: 4, kind: input, shape index: {}]   ;;  %s724_s5 = inlined_call_operand.hbm [shape: bf16[16,128], index: 5, kind: output, shape index: {}]  }
   0x1   :  { %11 = vsyncpa [#allocation6], 0 }
   0x2   :  { %12 = vsyncpa [#allocation9], 0 }
   0x3   :  { %13 = vsyncpa [#allocation4], 0  ;;  %s588_s18 = smov [#allocation5]   ;;  %s589_s20 = smov [#allocation2]  }
   0x4   :  { %s31_s19 = sshll.u32 %s588_s18, 4  ;;  %s19_s21 = sshll.u32 %s589_s20, 4  ;;  %s32_s19 = int_to_ptr.vmem [resolvable:$true] %s31_s19  ;;  %s627_s21 = int_to_ptr.vmem [resolvable:$true] %s19_s21 }
   0x5   :  { %s470_s24 = scalar_lea.hbm %s720_s1, 128 }
   0x6   :  { %p471_p0 = scmp.ne.s32.totalorder %s720_s1, %s470_s24  ;;  %p474_p1 = scmp.lt.u32.totalorder %s470_s24, %s720_s1 }
   0x8   :  { %p476_p2 = pnand %p474_p1, %p471_p0 }
   0xa   :  { %479 = shalt.err (!%p476_p2)
}
   0xb   :  { %s480_s29 = scalar_lea.vmem %s32_s19, 128  ;;  %p485_p4 = scmp.lt.s32.totalorder %s32_s19, %s32_s19 }
   0xc   :  { %p481_p3 = scmp.ne.s32.totalorder %s32_s19, %s480_s29  ;;  %p486_p5 = scmp.lt.s32.totalorder %s480_s29, %s480_s29 }
   0xe   :  { %p487_p6 = por %p486_p5, %p485_p4 }
  0x10   :  { %p488_p7 = pnand %p487_p6, %p481_p3 }
  0x12   :  { %491 = shalt.err (!%p488_p7)
}
  0x13   :  { %s590_s30 = smov 64   ;;  %s591_s6 = smov 4  }
  0x14   :  { %37 = dma.hbm_to_vmem [thread:$0]  %s720_s1, 128, %s32_s19, [#allocation6], %s590_s30, %s590_s30, %s591_s6  }
  0x15   :  { %s492_s11 = scalar_lea.hbm %s719_s0, 128 }
  0x16   :  { %p493_p8 = scmp.ne.s32.totalorder %s719_s0, %s492_s11  ;;  %p496_p9 = scmp.lt.u32.totalorder %s492_s11, %s719_s0 }
  0x18   :  { %p498_p10 = pnand %p496_p9, %p493_p8 }
  0x1a   :  { %501 = shalt.err (!%p498_p10)
}
  0x1b   :  { %s502_s16 = scalar_lea.vmem %s627_s21, 128  ;;  %p507_p12 = scmp.lt.s32.totalorder %s627_s21, %s627_s21 }
  0x1c   :  { %p503_p11 = scmp.ne.s32.totalorder %s627_s21, %s502_s16  ;;  %p508_p13 = scmp.lt.s32.totalorder %s502_s16, %s502_s16 }
  0x1e   :  { %p509_p0 = por %p508_p13, %p507_p12 }
  0x20   :  { %p510_p1 = pnand %p509_p0, %p503_p11 }
  0x22   :  { %513 = shalt.err (!%p510_p1)
}
  0x23   :  { %25 = dma.hbm_to_vmem [thread:$0]  %s719_s0, 128, %s627_s21, [#allocation3], %s590_s30, %s590_s30, %s591_s6  }
  0x24   :  { %s592_s18 = smov [#allocation7]   ;;  %s593_s20 = smov [#allocation8]  }
  0x25   :  { %s43_s19 = sshll.u32 %s592_s18, 4  ;;  %s55_s22 = sshll.u32 %s593_s20, 4  ;;  %s44_s19 = int_to_ptr.vmem [resolvable:$true] %s43_s19  ;;  %s664_s22 = int_to_ptr.vmem [resolvable:$true] %s55_s22 }
  0x26   :  { %s514_s25 = scalar_lea.hbm %s721_s2, 1024 }
  0x27   :  { %p515_p2 = scmp.ne.s32.totalorder %s721_s2, %s514_s25  ;;  %p518_p3 = scmp.lt.u32.totalorder %s514_s25, %s721_s2 }
  0x29   :  { %p520_p4 = pnand %p518_p3, %p515_p2 }
  0x2b   :  { %523 = shalt.err (!%p520_p4)
}
  0x2c   :  { %s524_s0 = scalar_lea.vmem %s44_s19, 1024  ;;  %p529_p6 = scmp.lt.s32.totalorder %s44_s19, %s44_s19 }
  0x2d   :  { %p525_p5 = scmp.ne.s32.totalorder %s44_s19, %s524_s0  ;;  %p530_p7 = scmp.lt.s32.totalorder %s524_s0, %s524_s0 }
  0x2f   :  { %p531_p8 = por %p530_p7, %p529_p6 }
  0x31   :  { %p532_p9 = pnand %p531_p8, %p525_p5 }
  0x33   :  { %535 = shalt.err (!%p532_p9)
}
  0x34   :  { %49 = dma.hbm_to_vmem [thread:$0]  %s721_s2, 1024, %s44_s19, [#allocation6], %s590_s30, %s590_s30, %s591_s6  }
  0x35   :  { %s536_s10 = scalar_lea.hbm %s722_s3, 1024 }
  0x36   :  { %p537_p10 = scmp.ne.s32.totalorder %s722_s3, %s536_s10  ;;  %p540_p11 = scmp.lt.u32.totalorder %s536_s10, %s722_s3 }
  0x38   :  { %p542_p12 = pnand %p540_p11, %p537_p10 }
  0x3a   :  { %545 = shalt.err (!%p542_p12)
}
  0x3b   :  { %s546_s15 = scalar_lea.vmem %s664_s22, 1024  ;;  %p551_p0 = scmp.lt.s32.totalorder %s664_s22, %s664_s22 }
  0x3c   :  { %p547_p13 = scmp.ne.s32.totalorder %s664_s22, %s546_s15  ;;  %p552_p1 = scmp.lt.s32.totalorder %s546_s15, %s546_s15 }
  0x3e   :  { %p553_p2 = por %p552_p1, %p551_p0 }
  0x40   :  { %p554_p3 = pnand %p553_p2, %p547_p13 }
  0x42   :  { %557 = shalt.err (!%p554_p3)
}
  0x43   :  { %61 = dma.hbm_to_vmem [thread:$0]  %s722_s3, 1024, %s664_s22, [#allocation9], %s590_s30, %s590_s30, %s591_s6  }
  0x44   :  { %580 = dma.done.wait [#allocation3], 128  }
  0x45   :  { %581 = vsyncadd [#allocation3], 4294967168 }
  0x46   :  { %582 = dma.done.wait [#allocation6], 1152  }
  0x47   :  { %583 = vsyncadd [#allocation6], 4294966144 }
  0x48   :  { %584 = dma.done.wait [#allocation9], 1024  }
  0x49   :  { %585 = vsyncadd [#allocation9], 4294966272  ;;  %v594_v0 = vmov 0.0   ;;  %vm595_vm0 = vmmov 0   ;;  %v448_v1 = vld [vmem:[#allocation8] sm:$0xff]   ;;  %v450_v3 = vld [vmem:[#allocation8 + $0x8] sm:$0xff]  }
  0x4a   :  { %399 = vmatprep.subr.bf16.mxu0 %v594_v0  ;;  %419 = vmatprep.subr.bf16.mxu1 %v594_v0  ;;  %v449_v2 = vld [vmem:[#allocation7] sm:$0xff]   ;;  %v451_v4 = vld [vmem:[#allocation7 + $0x8] sm:$0xff]   ;;  %v452_v5 = vld [vmem:[#allocation8 + $0x10] sm:$0xff]  }
  0x4b   :  { %415 = vmatprep.mubr.msk.bf16.mxu0 %vm595_vm0, %v594_v0  ;;  %435 = vmatprep.mubr.msk.bf16.mxu1 %vm595_vm0, %v594_v0  ;;  %v453_v6 = vld [vmem:[#allocation7 + $0x10] sm:$0xff]   ;;  %v454_v7 = vld [vmem:[#allocation8 + $0x18] sm:$0xff]   ;;  %v456_v9 = vld [vmem:[#allocation8 + $0x20] sm:$0xff]  }
  0x4c   :  { %400 = vmatpush3.bf16.msra.mxu0 %v448_v1  ;;  %420 = vmatpush3.bf16.msra.mxu1 %v449_v2  ;;  %v455_v8 = vld [vmem:[#allocation7 + $0x18] sm:$0xff]   ;;  %v457_v10 = vld [vmem:[#allocation7 + $0x20] sm:$0xff]   ;;  %v458_v11 = vld [vmem:[#allocation8 + $0x28] sm:$0xff]  }
  0x4d   :  { %401 = vmatprep.subr.bf16.mxu0 %v594_v0  ;;  %421 = vmatprep.subr.bf16.mxu1 %v594_v0  ;;  %v459_v12 = vld [vmem:[#allocation7 + $0x28] sm:$0xff]   ;;  %v460_v13 = vld [vmem:[#allocation8 + $0x30] sm:$0xff]   ;;  %v462_v15 = vld [vmem:[#allocation8 + $0x38] sm:$0xff]  }
  0x4e   :  { %v461_v14 = vld [vmem:[#allocation7 + $0x30] sm:$0xff]   ;;  %v463_v16 = vld [vmem:[#allocation7 + $0x38] sm:$0xff]  }
  0x4f   :  { %v464_v17 = vld [vmem:[#allocation5] sm:$0xff]   ;;  %v465_v18 = vld [vmem:[#allocation2] sm:$0xff]  }
  0x50   :  { %402 = vmatpush3.bf16.msra.mxu0 %v450_v3  ;;  %422 = vmatpush3.bf16.msra.mxu1 %v451_v4  ;;  %v371_v22 = vld [vmem:[%s723_s4] ss:$0 sm:$0xff]  ;;  %s596_s4 = smov [#allocation10]  }
  0x51   :  { %403 = vmatprep.subr.bf16.mxu0 %v594_v0  ;;  %423 = vmatprep.subr.bf16.mxu1 %v594_v0  ;;  %s339_s17 = sshll.u32 %s596_s4, 4  ;;  %s340_s17 = int_to_ptr.vmem [resolvable:$true] %s339_s17 }
  0x52   :  { %s558_s18 = scalar_lea.vmem %s340_s17, 128  ;;  %p563_p5 = scmp.lt.s32.totalorder %s340_s17, %s340_s17 }
  0x53   :  { %p559_p4 = scmp.ne.s32.totalorder %s340_s17, %s558_s18  ;;  %p564_p6 = scmp.lt.s32.totalorder %s558_s18, %s558_s18 }
  0x54   :  { %404 = vmatpush3.bf16.msra.mxu0 %v452_v5  ;;  %424 = vmatpush3.bf16.msra.mxu1 %v453_v6 }
  0x55   :  { %405 = vmatprep.subr.bf16.mxu0 %v594_v0  ;;  %425 = vmatprep.subr.bf16.mxu1 %v594_v0  ;;  %p565_p7 = por %p564_p6, %p563_p5 }
  0x57   :  { %p566_p8 = pnand %p565_p7, %p559_p4 }
  0x58   :  { %406 = vmatpush3.bf16.msra.mxu0 %v454_v7  ;;  %426 = vmatpush3.bf16.msra.mxu1 %v455_v8 }
  0x59   :  { %407 = vmatprep.subr.bf16.mxu0 %v594_v0  ;;  %427 = vmatprep.subr.bf16.mxu1 %v594_v0 }
  0x5c   :  { %408 = vmatpush3.bf16.msra.mxu0 %v456_v9  ;;  %428 = vmatpush3.bf16.msra.mxu1 %v457_v10 }
  0x5d   :  { %409 = vmatprep.subr.bf16.mxu0 %v594_v0  ;;  %429 = vmatprep.subr.bf16.mxu1 %v594_v0 }
  0x60   :  { %410 = vmatpush3.bf16.msra.mxu0 %v458_v11  ;;  %430 = vmatpush3.bf16.msra.mxu1 %v459_v12 }
  0x61   :  { %411 = vmatprep.subr.bf16.mxu0 %v594_v0  ;;  %431 = vmatprep.subr.bf16.mxu1 %v594_v0 }
  0x64   :  { %412 = vmatpush3.bf16.msra.mxu0 %v460_v13  ;;  %432 = vmatpush3.bf16.msra.mxu1 %v461_v14 }
  0x65   :  { %413 = vmatprep.subr.bf16.mxu0 %v594_v0  ;;  %433 = vmatprep.subr.bf16.mxu1 %v594_v0 }
  0x68   :  { %414 = vmatpush3.bf16.msra.mxu0 %v462_v15  ;;  %434 = vmatpush3.bf16.msra.mxu1 %v463_v16 }
  0x6b   :  { %416 = vmatmul.mubr.bf16.vlgmr.msra.gmra.mrb[0].mxu0 %v464_v17  ;;  %436 = vmatmul.mubr.bf16.vlgmr.msra.gmra.mrb[0].mxu1 %v465_v18 }
 0x13e   :  { %v201_v19 = vpop.f32.mrb[0].mxu0  ;;  %v296_v20 = vpop.f32.mrb[0].mxu1 }
 0x13f   :  { %v417_v21 = vpop.f32.mrb[1].mxu0  ;;  %v297_v23 = vadd.f32 %v296_v20, %v201_v19  ;;  %v437_v24 = vpop.f32.mrb[1].mxu1 }
 0x140   :  { %v204_v25 = vpop.f32.mrb[2].mxu0  ;;  %v299_v26 = vpop.f32.mrb[2].mxu1 }
 0x141   :  { %v418_v27 = vpop.f32.mrb[3].mxu0  ;;  %v300_v28 = vadd.f32 %v299_v26, %v204_v25  ;;  %v438_v29 = vpop.f32.mrb[3].mxu1  ;;  %v310_v30 = vadd.f32 %v371_v22, %v297_v23 }
 0x143   :  { %v311_v31 = vadd.f32 %v371_v22, %v300_v28  ;;  %v312_v32 = vmul.f32 %v310_v30, %v310_v30 }
 0x145   :  { %314 = vadd.xlane.f32.xlu0 %v312_v32  ;;  %v313_v33 = vmul.f32 %v311_v31, %v311_v31 }
 0x149   :  { %316 = vadd.xlane.f32.xlu0 %v313_v33 }
 0x1d2   :  { %v315_v34 = vpop.xlane.xlu0 %314 }
 0x1d3   :  { %v318_v35 = vmax.f32 %v315_v34, 1e-24 }
 0x1d5   :  { %466 = vrsqrt.f32 %v318_v35 }
 0x1d6   :  { %v317_v36 = vpop.xlane.xlu0 %316 }
 0x1d7   :  { %v319_v37 = vmax.f32 %v317_v36, 1e-24 }
 0x1d9   :  { %468 = vrsqrt.f32 %v319_v37 }
 0x1df   :  { %v467_v38 = vpop.eup %466 }
 0x1e0   :  { %v322_v40 = vmul.f32 %v467_v38, %v310_v30 }
 0x1e3   :  { %v469_v39 = vpop.eup %468 }
 0x1e4   :  { %v323_v41 = vmul.f32 %v469_v39, %v311_v31 }
 0x1e6   :  { %v379_v42 = vpack.c.bf16 %v323_v41, %v322_v40 }
 0x1e8   :  { %380 = vst [vmem:[#allocation10] sm:$0xff] %v379_v42  }
 0x1e9   :  { %569 = shalt.err (!%p566_p8)
}
 0x1ea   :  { %s570_s22 = scalar_lea.hbm %s724_s5, 128 }
 0x1eb   :  { %p571_p9 = scmp.ne.s32.totalorder %s724_s5, %s570_s22  ;;  %p574_p10 = scmp.lt.u32.totalorder %s570_s22, %s724_s5 }
 0x1ed   :  { %p576_p11 = pnand %p574_p10, %p571_p9 }
 0x1ef   :  { %579 = shalt.err (!%p576_p11)
}
 0x1f0   :  { %345 = dma.vmem_to_hbm [thread:$0]  %s340_s17, 128, %s724_s5, [#allocation4], %s590_s30, %s590_s30, %s591_s6  }
 0x1f1   :  { %586 = dma.done.wait [#allocation4], 128  }
 0x1f2   :  { %587 = vsyncadd [#allocation4], 4294967168 }
 0x1f3   :  { %349 = vsyncpa [#allocation3], 1 }
 0x1f4   :  { %350 = vsyncpa [#allocation6], 1 }
 0x1f5   :  { %351 = vsyncpa [#allocation9], 1 }
 0x1f6   :  { %352 = vsyncpa [#allocation4], 1 }

</bundles_post_ra>
